<compile_context>
chip_gen: v7x
topology: tpu7x:2x2x1
jax: 0.10.0
libtpu: 0.0.40
codegen_flags: <defaults>
</compile_context>

<pallas_src>
import functools

import jax
import jax.numpy as jnp
from jax.experimental import pallas as pl
from jax.experimental.pallas import tpu as pltpu


def _round_up(x, m):
    return (x + m - 1) // m * m


def residual_kernel(x_ref, w_ref, b_ref, o_ref, *, wp):
    """Fused 3x3 conv (+folded 1x1) + bias + ReLU over a lane-major slab.

    x_ref: (1, Cin, L)       zero-padded, spatially-flattened input slab
    w_ref: (9, Cout, Cin)    per-tap fused weights, tap index t = dy*3 + dx
    b_ref: (Cout, 1)         fused bias (f32)
    o_ref: (1, Cout, Ncomp)  output slab; lane n = b_in_block*S + h*(W+2) + w
    """
    xv = x_ref[0]                      # (Cin, L), loaded once
    L = xv.shape[-1]
    ncomp = o_ref.shape[-1]
    bias = b_ref[...]                  # (Cout, 1), f32

    acc = None
    for t in range(9):
        dy, dx = t // 3, t % 3
        off = dy * wp + dx
        # Tap (dy, dx) of the 3x3 stencil == the same slab shifted left by
        # `off` lanes.  pltpu.roll is an XLU lane rotation (doesn't touch the
        # vld/vst or VALU slots) and feeds the MXU directly -- no im2col slab.
        shifted = xv if off == 0 else pltpu.roll(xv, L - off, axis=1)
        part = jnp.dot(w_ref[t], shifted[:, :ncomp],
                       preferred_element_type=jnp.float32)
        acc = part if acc is None else acc + part

    o_ref[0] = jnp.maximum(acc + bias, 0.0).astype(o_ref.dtype)


def residual_forward(x_nchw, w3_hwio, b3, w1_io, b1, *, batch_block=1,
                     use_bf16=False):
    """x_nchw: (B, Cin, H, W) f32 -> relu(conv3x3(x)+b3 + conv1x1(x)+b1), NCHW."""
    B, Cin, H, W = x_nchw.shape
    Cout = w3_hwio.shape[3]
    assert B % batch_block == 0
    nb = B // batch_block

    Hp, Wp = H + 2, W + 2
    S = Hp * Wp                               # padded spatial size per image
    Ncomp = _round_up(batch_block * S, 128)   # lanes computed/stored per grid step
    L = _round_up(Ncomp + 2 * Wp + 2, 128)    # input slab lanes (max tap offset 2*Wp+2)

    # --- weights: fold the 1x1 downsample into the 3x3 centre tap (exact). ---
    w3_fused = w3_hwio.at[1, 1].add(w1_io)                            # (3,3,Cin,Cout)
    w_all = jnp.transpose(w3_fused.reshape(9, Cin, Cout), (0, 2, 1))  # (9,Cout,Cin)
    b_all = (b3 + b1).reshape(Cout, 1).astype(jnp.float32)            # (Cout,1)

    # --- input: pad spatially, flatten (Hp, Wp) and the batch block onto the
    # lane axis, zero-pad the tail to L lanes.  One XLA copy fusion over the
    # input (replaces the plain jnp.pad of the previous version).
    # TODO(synk): on v5e, fuse this pad/relayout into the kernel (manual DMA
    # into zero-initialised VMEM scratch) to save one HBM round trip.
    xp = jnp.pad(x_nchw, ((0, 0), (0, 0), (1, 1), (1, 1)))            # (B,Cin,Hp,Wp)
    xp = xp.reshape(nb, batch_block, Cin, S)
    xp = jnp.transpose(xp, (0, 2, 1, 3)).reshape(nb, Cin, batch_block * S)
    xp = jnp.pad(xp, ((0, 0), (0, 0), (0, L - batch_block * S)))      # (nb,Cin,L)

    op_dtype = jnp.bfloat16 if use_bf16 else jnp.float32
    xp = xp.astype(op_dtype)
    w_all = w_all.astype(op_dtype)

    # TODO(synk): for production BEV resolutions, add a row-tile grid axis with
    # a 1-row halo (and re-size vmem_limit_bytes per generation) instead of
    # whole-image blocks.
    out = pl.pallas_call(
        functools.partial(residual_kernel, wp=Wp),
        out_shape=jax.ShapeDtypeStruct((nb, Cout, Ncomp), jnp.float32),
        grid_spec=pltpu.PrefetchScalarGridSpec(
            num_scalar_prefetch=0,
            grid=(nb,),
            in_specs=[
                pl.BlockSpec((1, Cin, L), lambda g: (g, 0, 0)),
                pl.BlockSpec((9, Cout, Cin), lambda g: (0, 0, 0)),
                pl.BlockSpec((Cout, 1), lambda g: (0, 0)),
            ],
            out_specs=pl.BlockSpec((1, Cout, Ncomp), lambda g: (g, 0, 0)),
        ),
        compiler_params=pltpu.CompilerParams(
            dimension_semantics=("parallel",),
            vmem_limit_bytes=32 * 1024 * 1024,
        ),
    )(xp, w_all, b_all)

    # Drop lane padding / junk pad-columns and restore NCHW (single output-sized
    # XLA slice pass; kernel-side stores stay fully lane-dense).
    out = out[:, :, :batch_block * S]
    out = out.reshape(nb, Cout, batch_block, Hp, Wp)
    out = jnp.transpose(out, (0, 2, 1, 3, 4)).reshape(B, Cout, Hp, Wp)
    return out[:, :, :H, :W]


def reference(x_nchw, w3_hwio, b3, w1_io, b1):
    """Pure-JAX reference matching PyTorch Residual semantics."""
    w3_oihw = jnp.transpose(w3_hwio, (3, 2, 0, 1))             # (Cout, Cin, 3, 3)
    w1_oihw = jnp.transpose(w1_io, (1, 0))[:, :, None, None]   # (Cout, Cin, 1, 1)
    out = jax.lax.conv_general_dilated(
        x_nchw, w3_oihw, (1, 1), ((1, 1), (1, 1)),
        dimension_numbers=("NCHW", "OIHW", "NCHW")) + b3[None, :, None, None]
    identity = jax.lax.conv_general_dilated(
        x_nchw, w1_oihw, (1, 1), "VALID",
        dimension_numbers=("NCHW", "OIHW", "NCHW")) + b1[None, :, None, None]
    return jnp.maximum(out + identity, 0.0)


if __name__ == "__main__":
    B, Cin, Cout, H, W = 2, 4, 8, 16, 16

    key = jax.random.PRNGKey(0)
    kx, k3, kb3, k1, kb1 = jax.random.split(key, 5)

    x = jax.random.normal(kx, (B, Cin, H, W), dtype=jnp.float32)
    w3 = jax.random.normal(k3, (3, 3, Cin, Cout), dtype=jnp.float32) * 0.1
    b3 = jax.random.normal(kb3, (Cout,), dtype=jnp.float32) * 0.1
    w1 = jax.random.normal(k1, (Cin, Cout), dtype=jnp.float32) * 0.1
    b1 = jax.random.normal(kb1, (Cout,), dtype=jnp.float32) * 0.1

    ref = jax.block_until_ready(reference(x, w3, b3, w1, b1))

    # Exact-precision (f32 operand) path.
    out = jax.block_until_ready(
        residual_forward(x, w3, b3, w1, b1, batch_block=1, use_bf16=False))
    assert out.shape == (B, Cout, H, W)
    assert jnp.allclose(out, ref, atol=1e-4, rtol=1e-4), "f32 mismatch vs reference"

    # bf16 MXU-operand path (f32 accumulation / epilogue) -- looser tolerance.
    out_bf16 = jax.block_until_ready(
        residual_forward(x, w3, b3, w1, b1, batch_block=1, use_bf16=True))
    assert jnp.allclose(out_bf16, ref, atol=5e-2, rtol=5e-2), "bf16 mismatch vs reference"

    print("KERNEL_OK")
</pallas_src>

<mosaic_0001>
module attributes {stable_mosaic.version = 11 : i64} {
  func.func @residual_kernel(%arg0: i32, %arg1: memref<1x4x512xf32, #tpu.memory_space<vmem>>, %arg2: memref<9x8x4xf32, #tpu.memory_space<vmem>>, %arg3: memref<8x1xf32, #tpu.memory_space<vmem>>, %arg4: memref<1x8x384xf32, #tpu.memory_space<vmem>>) attributes {dimension_semantics = [#tpu.dimension_semantics<parallel>], iteration_bounds = array<i64: 2>, scalar_prefetch = 0 : i64, scratch_operands = 0 : i64, tpu.core_type = #tpu.core_type<tc>, window_params = [{transform_indices = @transform_0, window_bounds = array<i64: 1, 4, 512>}, {pipeline_mode = #tpu.pipeline_mode<synchronous>, transform_indices = @transform_1, window_bounds = array<i64: 9, 8, 4>}, {pipeline_mode = #tpu.pipeline_mode<synchronous>, transform_indices = @transform_2, window_bounds = array<i64: 8, 1>}, {transform_indices = @transform_3, window_bounds = array<i64: 1, 8, 384>}]} {
    %c0 = arith.constant 0 : index
    %c0_0 = arith.constant 0 : index
    %c0_1 = arith.constant 0 : index
    %0 = vector.load %arg1[%c0, %c0_0, %c0_1] : memref<1x4x512xf32, #tpu.memory_space<vmem>>, vector<1x4x512xf32>
    %1 = vector.shape_cast %0 : vector<1x4x512xf32> to vector<4x512xf32>
    %c0_2 = arith.constant 0 : index
    %c0_3 = arith.constant 0 : index
    %2 = vector.load %arg3[%c0_2, %c0_3] : memref<8x1xf32, #tpu.memory_space<vmem>>, vector<8x1xf32>
    %c0_4 = arith.constant 0 : index
    %c0_5 = arith.constant 0 : index
    %c0_6 = arith.constant 0 : index
    %3 = vector.load %arg2[%c0_4, %c0_5, %c0_6] : memref<9x8x4xf32, #tpu.memory_space<vmem>>, vector<1x8x4xf32>
    %4 = vector.shape_cast %3 : vector<1x8x4xf32> to vector<8x4xf32>
    %5 = vector.extract_strided_slice %1 {offsets = [0, 0], sizes = [4, 384], strides = [1, 1]} : vector<4x512xf32> to vector<4x384xf32>
    %cst = arith.constant dense<0.000000e+00> : vector<8x384xf32>
    %6 = tpu.matmul %4, %5, %cst {dimension_numbers = #tpu.dot_dimension_numbers<[1], [0], [0], [1], [0, 0, 1, 1], [], []>} : vector<8x4xf32>, vector<4x384xf32>, vector<8x384xf32> -> vector<8x384xf32>
    %c511_i32 = arith.constant 511 : i32
    %7 = tpu.dynamic_rotate %1 by %c511_i32 dim 1 : vector<4x512xf32>, i32 -> vector<4x512xf32>
    %c1 = arith.constant 1 : index
    %c0_7 = arith.constant 0 : index
    %c0_8 = arith.constant 0 : index
    %8 = vector.load %arg2[%c1, %c0_7, %c0_8] : memref<9x8x4xf32, #tpu.memory_space<vmem>>, vector<1x8x4xf32>
    %9 = vector.shape_cast %8 : vector<1x8x4xf32> to vector<8x4xf32>
    %10 = vector.extract_strided_slice %7 {offsets = [0, 0], sizes = [4, 384], strides = [1, 1]} : vector<4x512xf32> to vector<4x384xf32>
    %cst_9 = arith.constant dense<0.000000e+00> : vector<8x384xf32>
    %11 = tpu.matmul %9, %10, %cst_9 {dimension_numbers = #tpu.dot_dimension_numbers<[1], [0], [0], [1], [0, 0, 1, 1], [], []>} : vector<8x4xf32>, vector<4x384xf32>, vector<8x384xf32> -> vector<8x384xf32>
    %12 = arith.addf %6, %11 : vector<8x384xf32>
    %c510_i32 = arith.constant 510 : i32
    %13 = tpu.dynamic_rotate %1 by %c510_i32 dim 1 : vector<4x512xf32>, i32 -> vector<4x512xf32>
    %c2 = arith.constant 2 : index
    %c0_10 = arith.constant 0 : index
    %c0_11 = arith.constant 0 : index
    %14 = vector.load %arg2[%c2, %c0_10, %c0_11] : memref<9x8x4xf32, #tpu.memory_space<vmem>>, vector<1x8x4xf32>
    %15 = vector.shape_cast %14 : vector<1x8x4xf32> to vector<8x4xf32>
    %16 = vector.extract_strided_slice %13 {offsets = [0, 0], sizes = [4, 384], strides = [1, 1]} : vector<4x512xf32> to vector<4x384xf32>
    %cst_12 = arith.constant dense<0.000000e+00> : vector<8x384xf32>
    %17 = tpu.matmul %15, %16, %cst_12 {dimension_numbers = #tpu.dot_dimension_numbers<[1], [0], [0], [1], [0, 0, 1, 1], [], []>} : vector<8x4xf32>, vector<4x384xf32>, vector<8x384xf32> -> vector<8x384xf32>
    %18 = arith.addf %12, %17 : vector<8x384xf32>
    %c494_i32 = arith.constant 494 : i32
    %19 = tpu.dynamic_rotate %1 by %c494_i32 dim 1 : vector<4x512xf32>, i32 -> vector<4x512xf32>
    %c3 = arith.constant 3 : index
    %c0_13 = arith.constant 0 : index
    %c0_14 = arith.constant 0 : index
    %20 = vector.load %arg2[%c3, %c0_13, %c0_14] : memref<9x8x4xf32, #tpu.memory_space<vmem>>, vector<1x8x4xf32>
    %21 = vector.shape_cast %20 : vector<1x8x4xf32> to vector<8x4xf32>
    %22 = vector.extract_strided_slice %19 {offsets = [0, 0], sizes = [4, 384], strides = [1, 1]} : vector<4x512xf32> to vector<4x384xf32>
    %cst_15 = arith.constant dense<0.000000e+00> : vector<8x384xf32>
    %23 = tpu.matmul %21, %22, %cst_15 {dimension_numbers = #tpu.dot_dimension_numbers<[1], [0], [0], [1], [0, 0, 1, 1], [], []>} : vector<8x4xf32>, vector<4x384xf32>, vector<8x384xf32> -> vector<8x384xf32>
    %24 = arith.addf %18, %23 : vector<8x384xf32>
    %c493_i32 = arith.constant 493 : i32
    %25 = tpu.dynamic_rotate %1 by %c493_i32 dim 1 : vector<4x512xf32>, i32 -> vector<4x512xf32>
    %c4 = arith.constant 4 : index
    %c0_16 = arith.constant 0 : index
    %c0_17 = arith.constant 0 : index
    %26 = vector.load %arg2[%c4, %c0_16, %c0_17] : memref<9x8x4xf32, #tpu.memory_space<vmem>>, vector<1x8x4xf32>
    %27 = vector.shape_cast %26 : vector<1x8x4xf32> to vector<8x4xf32>
    %28 = vector.extract_strided_slice %25 {offsets = [0, 0], sizes = [4, 384], strides = [1, 1]} : vector<4x512xf32> to vector<4x384xf32>
    %cst_18 = arith.constant dense<0.000000e+00> : vector<8x384xf32>
    %29 = tpu.matmul %27, %28, %cst_18 {dimension_numbers = #tpu.dot_dimension_numbers<[1], [0], [0], [1], [0, 0, 1, 1], [], []>} : vector<8x4xf32>, vector<4x384xf32>, vector<8x384xf32> -> vector<8x384xf32>
    %30 = arith.addf %24, %29 : vector<8x384xf32>
    %c492_i32 = arith.constant 492 : i32
    %31 = tpu.dynamic_rotate %1 by %c492_i32 dim 1 : vector<4x512xf32>, i32 -> vector<4x512xf32>
    %c5 = arith.constant 5 : index
    %c0_19 = arith.constant 0 : index
    %c0_20 = arith.constant 0 : index
    %32 = vector.load %arg2[%c5, %c0_19, %c0_20] : memref<9x8x4xf32, #tpu.memory_space<vmem>>, vector<1x8x4xf32>
    %33 = vector.shape_cast %32 : vector<1x8x4xf32> to vector<8x4xf32>
    %34 = vector.extract_strided_slice %31 {offsets = [0, 0], sizes = [4, 384], strides = [1, 1]} : vector<4x512xf32> to vector<4x384xf32>
    %cst_21 = arith.constant dense<0.000000e+00> : vector<8x384xf32>
    %35 = tpu.matmul %33, %34, %cst_21 {dimension_numbers = #tpu.dot_dimension_numbers<[1], [0], [0], [1], [0, 0, 1, 1], [], []>} : vector<8x4xf32>, vector<4x384xf32>, vector<8x384xf32> -> vector<8x384xf32>
    %36 = arith.addf %30, %35 : vector<8x384xf32>
    %c476_i32 = arith.constant 476 : i32
    %37 = tpu.dynamic_rotate %1 by %c476_i32 dim 1 : vector<4x512xf32>, i32 -> vector<4x512xf32>
    %c6 = arith.constant 6 : index
    %c0_22 = arith.constant 0 : index
    %c0_23 = arith.constant 0 : index
    %38 = vector.load %arg2[%c6, %c0_22, %c0_23] : memref<9x8x4xf32, #tpu.memory_space<vmem>>, vector<1x8x4xf32>
    %39 = vector.shape_cast %38 : vector<1x8x4xf32> to vector<8x4xf32>
    %40 = vector.extract_strided_slice %37 {offsets = [0, 0], sizes = [4, 384], strides = [1, 1]} : vector<4x512xf32> to vector<4x384xf32>
    %cst_24 = arith.constant dense<0.000000e+00> : vector<8x384xf32>
    %41 = tpu.matmul %39, %40, %cst_24 {dimension_numbers = #tpu.dot_dimension_numbers<[1], [0], [0], [1], [0, 0, 1, 1], [], []>} : vector<8x4xf32>, vector<4x384xf32>, vector<8x384xf32> -> vector<8x384xf32>
    %42 = arith.addf %36, %41 : vector<8x384xf32>
    %c475_i32 = arith.constant 475 : i32
    %43 = tpu.dynamic_rotate %1 by %c475_i32 dim 1 : vector<4x512xf32>, i32 -> vector<4x512xf32>
    %c7 = arith.constant 7 : index
    %c0_25 = arith.constant 0 : index
    %c0_26 = arith.constant 0 : index
    %44 = vector.load %arg2[%c7, %c0_25, %c0_26] : memref<9x8x4xf32, #tpu.memory_space<vmem>>, vector<1x8x4xf32>
    %45 = vector.shape_cast %44 : vector<1x8x4xf32> to vector<8x4xf32>
    %46 = vector.extract_strided_slice %43 {offsets = [0, 0], sizes = [4, 384], strides = [1, 1]} : vector<4x512xf32> to vector<4x384xf32>
    %cst_27 = arith.constant dense<0.000000e+00> : vector<8x384xf32>
    %47 = tpu.matmul %45, %46, %cst_27 {dimension_numbers = #tpu.dot_dimension_numbers<[1], [0], [0], [1], [0, 0, 1, 1], [], []>} : vector<8x4xf32>, vector<4x384xf32>, vector<8x384xf32> -> vector<8x384xf32>
    %48 = arith.addf %42, %47 : vector<8x384xf32>
    %c474_i32 = arith.constant 474 : i32
    %49 = tpu.dynamic_rotate %1 by %c474_i32 dim 1 : vector<4x512xf32>, i32 -> vector<4x512xf32>
    %c8 = arith.constant 8 : index
    %c0_28 = arith.constant 0 : index
    %c0_29 = arith.constant 0 : index
    %50 = vector.load %arg2[%c8, %c0_28, %c0_29] : memref<9x8x4xf32, #tpu.memory_space<vmem>>, vector<1x8x4xf32>
    %51 = vector.shape_cast %50 : vector<1x8x4xf32> to vector<8x4xf32>
    %52 = vector.extract_strided_slice %49 {offsets = [0, 0], sizes = [4, 384], strides = [1, 1]} : vector<4x512xf32> to vector<4x384xf32>
    %cst_30 = arith.constant dense<0.000000e+00> : vector<8x384xf32>
    %53 = tpu.matmul %51, %52, %cst_30 {dimension_numbers = #tpu.dot_dimension_numbers<[1], [0], [0], [1], [0, 0, 1, 1], [], []>} : vector<8x4xf32>, vector<4x384xf32>, vector<8x384xf32> -> vector<8x384xf32>
    %54 = arith.addf %48, %53 : vector<8x384xf32>
    %55 = vector.broadcast %2 : vector<8x1xf32> to vector<8x384xf32>
    %56 = arith.addf %54, %55 : vector<8x384xf32>
    %cst_31 = arith.constant 0.000000e+00 : f32
    %57 = vector.broadcast %cst_31 : f32 to vector<8x384xf32>
    %58 = arith.maximumf %56, %57 : vector<8x384xf32>
    %c0_32 = arith.constant 0 : index
    %c0_33 = arith.constant 0 : index
    %c0_34 = arith.constant 0 : index
    %59 = vector.load %arg4[%c0_32, %c0_33, %c0_34] : memref<1x8x384xf32, #tpu.memory_space<vmem>>, vector<1x8x384xf32>
    %60 = vector.shape_cast %59 : vector<1x8x384xf32> to vector<8x384xf32>
    %61 = vector.shape_cast %58 : vector<8x384xf32> to vector<1x8x384xf32>
    tpu.vector_store %arg4[%c0_32, %c0_33, %c0_34], %61 {strides = array<i32>} : memref<1x8x384xf32, #tpu.memory_space<vmem>>, vector<1x8x384xf32>,
    return
  }
  func.func @transform_0(%arg0: i32) -> (i32, i32, i32) {
    %c0_i32 = arith.constant 0 : i32
    %c0_i32_0 = arith.constant 0 : i32
    %c0_i32_1 = arith.constant 0 : i32
    return %arg0, %c0_i32, %c0_i32_0 : i32, i32, i32
  }
  func.func @transform_1(%arg0: i32) -> (i32, i32, i32) {
    %c0_i32 = arith.constant 0 : i32
    %c0_i32_0 = arith.constant 0 : i32
    %c0_i32_1 = arith.constant 0 : i32
    %c0_i32_2 = arith.constant 0 : i32
    return %c0_i32, %c0_i32_0, %c0_i32_1 : i32, i32, i32
  }
  func.func @transform_2(%arg0: i32) -> (i32, i32) {
    %c0_i32 = arith.constant 0 : i32
    %c0_i32_0 = arith.constant 0 : i32
    %c0_i32_1 = arith.constant 0 : i32
    return %c0_i32, %c0_i32_0 : i32, i32
  }
  func.func @transform_3(%arg0: i32) -> (i32, i32, i32) {
    %c0_i32 = arith.constant 0 : i32
    %c0_i32_0 = arith.constant 0 : i32
    %c0_i32_1 = arith.constant 0 : i32
    return %arg0, %c0_i32, %c0_i32_0 : i32, i32, i32
  }
}

</mosaic_0001>

<bundles_post_ra>
// kernel: tpu_custom_call.1
= control target key start
LH: loop header
LB: loop body
LE: loop exit
PB: predicated region body
PF: predicated region fallthrough
CT: control target
= control target key end

     0   :  { %8 = vsyncpa [#allocation3], 0  ;;  %s2371_s0 = inlined_call_operand.vmem [shape: f32[2,4,512], index: 0, kind: input, shape index: {}]   ;;  %s2372_s1 = inlined_call_operand.vmem [shape: f32[9,8,4], index: 1, kind: input, shape index: {}]   ;;  %s2373_s2 = inlined_call_operand.vmem [shape: f32[8,1], index: 2, kind: input, shape index: {}]   ;;  %s2374_s3 = inlined_call_operand.hbm [shape: f32[2,8,384], index: 3, kind: output, shape index: {}]  }
   0x1   :  { %10 = vsyncpa [#allocation3 + $0x1], 0  ;;  %s2071_s12 = smov 0   ;;  %s2073_s13 = smov 0  }
   0x2   :  { %s2075_s14 = smov 0   ;;  %s2077_s15 = smov 0  }
   0x3 LB: > { %s2092_s16 = sadd.s32 4294967295, %s2037_s15   ;;  %s1778_s17 = sadd.s32 4294967294, %s2037_s15   ;;  %s2037_s15 = sphi %s2077_s15, %s2380_s15   ;;  %s2033_s14 = sphi %s2075_s14, %s2379_s14   ;;  %s2029_s13 = sphi %s2073_s13, %s2378_s13   ;;  %s2025_s12 = sphi %s2071_s12, %s2377_s12  }
   0x4   : > { %s2096_s18 = sadd.s32 1, %s2037_s15   ;;  %s91_s19 = sadd.s32 1, %s2033_s14 }
   0x5   : > { %s88_s20 = ssub.s32 %s2037_s15, %s2096_s18  ;;  %p101_p0 = scmp.ne.s32.totalorder %s2033_s14, %s2029_s13 }
   0x6   : > { %p89_p1 = scmp.eq.s32.totalorder %s88_s20, 0  ;;  %p102_p2 = scmp.eq.s32.totalorder %s2092_s16, 1 }
   0x7   : > { %p107_p3 = scmp.ne.s32.totalorder %s2029_s13, %s2025_s12  ;;  %p108_p4 = scmp.eq.s32.totalorder %s1778_s17, 1 }
   0x8   : > { %s2107_s21 = scalar_select %p89_p1, %s2033_s14, %s91_s19  }
   0x9   : > { %p2109_p5 = por %p102_p2, %p101_p0  ;;  %p2113_p6 = por %p108_p4, %p107_p3 }
   0xa   : > { %p1781_p7 = scmp.ge.s32.totalorder %s2037_s15, 1  ;;  %p140_p8 = scmp.lt.s32.totalorder %s2037_s15, 3 }
   0xc   : > { %p141_p9 = pnand %p1781_p7, %p140_p8 }
   0xd   : > { %p164_p10 = scmp.lt.s32.totalorder (!%p141_p9), %s2092_s16, 1  ;;  %v2039_v0 = vmov (!%p141_p9), 0.0   ;;  %s2040_s29 = smov (!%p141_p9), 127   ;;  %vm2042_vm0 = vmmov (!%p141_p9), 0   ;;  %v2049_v5 = vmov (!%p141_p9), 0   ;;  %v171_v6 = vld [vmem:[%s2373_s2] sm:$0xff] (!%p141_p9)  ;;  %v187_v7 = vlaneseq (!%p141_p9) }
   0xe   : > { %144 = sbr.rel (%p141_p9) target bundleno = 445 (0x1bd), region = 32  ;;  %273 = vmatprep.mubr.f32.mxu0 (!%p141_p9), %v2039_v0  ;;  %1859 = vmatprep.subr.mxu1 (!%p141_p9), %v2039_v0  ;;  %s2041_s30 = smov (!%p141_p9), 126   ;;  %vm199_vm2 = vcmask (!%p141_p9), 1043456   ;;  %v1784_v14 = vld [vmem:[%s2372_s1 + $0x8] sm:$0xff] (!%p141_p9)  ;;  %vm195_vm3 = vcmask (!%p141_p9), 31744   ;;  %v172_v21 = vld [vmem:[%s2372_s1] sm:$0xff] (!%p141_p9) }
   0xf   : > { %1861 = vmatprep.mubr.msk.f32.mxu1 (!%p141_p9), %vm2042_vm0, %v2039_v0  ;;  %s2043_s4 = smov (!%p141_p9), 110   ;;  %s2044_s5 = smov (!%p141_p9), 109   ;;  %1972 = vset.pattern.permute.xlu0 (!%p141_p9), %v2049_v5  ;;  %v2165_v9 = vand.u32 (!%p141_p9), 127, %v187_v7  ;;  %v1795_v29 = vld [vmem:[%s2372_s1 + $0x10] sm:$0xff] (!%p141_p9)  ;;  %v1801_v37 = vld [vmem:[%s2372_s1 + $0x18] sm:$0xff] (!%p141_p9)  ;;  %v1807_v46 = vld [vmem:[%s2372_s1 + $0x20] sm:$0xff] (!%p141_p9) }
  0x10   : > { %s2045_s6 = smov (!%p141_p9), 108   ;;  %s2046_s7 = smov (!%p141_p9), 92   ;;  %v1813_v53 = vld [vmem:[%s2372_s1 + $0x28] sm:$0xff] (!%p141_p9)  ;;  %v1819_v59 = vld [vmem:[%s2372_s1 + $0x30] sm:$0xff] (!%p141_p9) }
  0x11   : > { %s2047_s8 = smov (!%p141_p9), 91   ;;  %s2048_s9 = smov (!%p141_p9), 90   ;;  %vm189_vm1 = vcmp.lt.s32.totalorder (!%p141_p9), %v2165_v9, 127  ;;  %vm508_vm4 = vcmp.lt.s32.totalorder (!%p141_p9), %v2165_v9, 126  ;;  %vm678_vm5 = vcmp.lt.s32.totalorder (!%p141_p9), %v2165_v9, 110  ;;  %vm848_vm6 = vcmp.lt.s32.totalorder (!%p141_p9), %v2165_v9, 109 }
  0x12   : > { %vm1018_vm7 = vcmp.lt.s32.totalorder (!%p141_p9), %v2165_v9, 108  ;;  %vm1188_vm8 = vcmp.lt.s32.totalorder (!%p141_p9), %v2165_v9, 92  ;;  %vm1358_vm9 = vcmp.lt.s32.totalorder (!%p141_p9), %v2165_v9, 91  ;;  %vm1528_vm10 = vcmp.lt.s32.totalorder (!%p141_p9), %v2165_v9, 90  ;;  %s161_s17 = sand.u32 (!%p141_p9), 1, %s2029_s13  }
  0x13   : > { %s1920_s19 = smul.u32 (!%p141_p9), 24, %s161_s17 }
  0x15   : > { %s165_s24 = scalar_select %p164_p10, %s2092_s16, 1 }
  0x16   : > { %s163_s20 = scalar_lea.vmem [#allocation2], %s1920_s19 }
  0x17   : > { %s1840_s25 = sshll.u32 %s165_s24, 4  ;;  %s1921_s24 = smul.u32 384, %s2092_s16 }
  0x18   : > { %s168_s28 = scalar_lea.vmem %s2371_s0, %s1840_s25  ;;  %s1719_s25 = sshll.u32 %s163_s20, 4  ;;  %s2331_s25 = int_to_ptr.vmem [resolvable:$true] %s1719_s25 }
  0x19   : > { %v2126_v1 = vld [vmem:[%s168_s28] sm:$0xff]  ;;  %v2134_v3 = vld [vmem:[%s168_s28 + $0x8] sm:$0xff]  ;;  %s2329_s28 = scalar_lea.hbm %s2374_s3, %s1921_s24  ;;  %s1975_s16 = scalar_lea.vmem %s2331_s25, 384 }
  0x1a   : > { %179 = vrot.lane.b32.xlu1 %v2126_v1, %s2040_s29  ;;  %v2131_v2 = vcombine.high %v2126_v1, %v2126_v1  ;;  %v176_v4 = vcombine.high %v2134_v3, %v2134_v3  ;;  %p1976_p11 = scmp.ne.s32.totalorder %s2331_s25, %s1975_s16 }
  0x1c   : > { %181 = vrot.lane.b32.xlu0 %v2131_v2, %s2040_s29  ;;  %p1977_p12 = pnand %p1976_p11, %p2109_p5 }
  0x1e   : > { %500 = vrot.lane.b32.xlu1 %v2126_v1, %s2041_s30  ;;  %p1978_p13 = pneg %p1977_p12 }
  0x20   : > { %183 = vrot.lane.b32.xlu0 %v2134_v3, %s2040_s29 }
  0x22   : > { %502 = vrot.lane.b32.xlu1 %v2131_v2, %s2041_s30 }
  0x24   : > { %504 = vrot.lane.b32.xlu0 %v2134_v3, %s2041_s30 }
  0x26   : > { %674 = vrot.lane.b32.xlu1 %v2134_v3, %s2043_s4 }
  0x28   : > { %672 = vrot.lane.b32.xlu0 %v2131_v2, %s2043_s4 }
  0x2a   : > { %185 = vrot.lane.b32.xlu1 %v176_v4, %s2040_s29  ;;  %s1705_s29 = scalar_lea.sflag [#allocation3], %s161_s17 }
  0x2c   : > { %670 = vrot.lane.b32.xlu0 %v2126_v1, %s2043_s4 }
  0x2e   : > { %844 = vrot.lane.b32.xlu1 %v2134_v3, %s2044_s5 }
  0x30   : > { %842 = vrot.lane.b32.xlu0 %v2131_v2, %s2044_s5 }
  0x32   : > { %506 = vrot.lane.b32.xlu1 %v176_v4, %s2041_s30  ;;  %s2050_s30 = smov [#allocation2]  }
  0x34   : > { %840 = vrot.lane.b32.xlu0 %v2126_v1, %s2044_s5 }
  0x36   : > { %1014 = vrot.lane.b32.xlu1 %v2134_v3, %s2045_s6 }
  0x38   : > { %1012 = vrot.lane.b32.xlu0 %v2131_v2, %s2045_s6 }
  0x3a   : > { %676 = vrot.lane.b32.xlu1 %v176_v4, %s2043_s4  ;;  %s1979_s4 = sshll.u32 %s2050_s30, 4  ;;  %s1980_s4 = int_to_ptr.vmem [resolvable:$false] %s1979_s4 }
  0x3b   : > { %p1982_p0 = scmp.lt.s32.totalorder %s2331_s25, %s1980_s4 }
  0x3c   : > { %1010 = vrot.lane.b32.xlu0 %v2126_v1, %s2045_s6 }
  0x3e   : > { %1182 = vrot.lane.b32.xlu1 %v2131_v2, %s2046_s7 }
  0x40   : > { %846 = vrot.lane.b32.xlu0 %v176_v4, %s2044_s5  ;;  %s1981_s5 = scalar_lea.vmem %s1980_s4, 768 }
  0x41   : > { %p1983_p1 = scmp.lt.s32.totalorder %s1981_s5, %s1975_s16 }
  0x42   : > { %1180 = vrot.lane.b32.xlu1 %v2126_v1, %s2046_s7 }
  0x43   : > { %p1984_p2 = por %p1983_p1, %p1982_p0 }
  0x44   : > { %1184 = vrot.lane.b32.xlu0 %v2134_v3, %s2046_s7 }
  0x45   : > { %p1985_p3 = pnand %p1984_p2, %p1978_p13 }
  0x46   : > { %1186 = vrot.lane.b32.xlu1 %v176_v4, %s2046_s7 }
  0x48   : > { %1016 = vrot.lane.b32.xlu0 %v176_v4, %s2045_s6 }
  0x4a   : > { %1354 = vrot.lane.b32.xlu1 %v2134_v3, %s2047_s8 }
  0x4c   : > { %1352 = vrot.lane.b32.xlu0 %v2131_v2, %s2047_s8 }
  0x4e   : > { %1356 = vrot.lane.b32.xlu1 %v176_v4, %s2047_s8 }
  0x50   : > { %1350 = vrot.lane.b32.xlu0 %v2126_v1, %s2047_s8 }
  0x52   : > { %1524 = vrot.lane.b32.xlu1 %v2134_v3, %s2048_s9 }
  0x54   : > { %1522 = vrot.lane.b32.xlu0 %v2131_v2, %s2048_s9 }
  0x56   : > { %1520 = vrot.lane.b32.xlu1 %v2126_v1, %s2048_s9 }
  0x58   : > { %1526 = vrot.lane.b32.xlu0 %v176_v4, %s2048_s9 }
  0x5c   : > { %1692 = vperm.xlu0 %1972, %v171_v6  }
  0x8c   : > { %v180_v8 = vpop.permute.xlu1 %179 }
  0x8e   : > { %v182_v10 = vpop.permute.xlu0 %181 }
  0x8f   : > { %v192_v16 = vsel %vm189_vm1, %v180_v8, %v182_v10  ;;  %v1831_v8 = vld [vmem:[%s2372_s1 + $0x40] sm:$0xff] }
  0x90   : > { %v501_v11 = vpop.permute.xlu1 %500 }
  0x92   : > { %v184_v12 = vpop.permute.xlu0 %183 }
  0x93   : > { %v191_v13 = vsel %vm189_vm1, %v182_v10, %v184_v12 }
  0x94   : > { %v503_v15 = vpop.permute.xlu1 %502  ;;  %1785 = vmatprep.subr.msk.mxu0 %vm199_vm2, %v191_v13 }
  0x95   : > { %1786 = vmatpush1.msk.msra.mxu0 %vm199_vm2, %v192_v16  ;;  %v511_v22 = vsel %vm508_vm4, %v501_v11, %v503_v15 }
  0x96   : > { %1787 = vmatmul.mubr.msk.f32.vlgmr.msra.gmra.mrb[0].mxu0 %vm195_vm3, %v1784_v14  ;;  %1790 = vmatprep.subr.msk.mxu0 %vm199_vm2, %v2131_v2  ;;  %v505_v17 = vpop.permute.xlu0 %504 }
  0x97   : > { %v510_v18 = vsel %vm508_vm4, %v503_v15, %v505_v17  ;;  %1791 = vmatpush1.msk.msra.mxu0 %vm199_vm2, %v2126_v1  ;;  %423 = vmatprep.mubr.f32.mxu0 %v2039_v0  ;;  %v1825_v1 = vld [vmem:[%s2372_s1 + $0x38] sm:$0xff] }
  0x98   : > { %v675_v19 = vpop.permute.xlu1 %674  ;;  %1796 = vmatprep.subr.msk.mxu0 %vm199_vm2, %v510_v18 }
  0x9a   : > { %v673_v20 = vpop.permute.xlu0 %672 }
  0x9b   : > { %v680_v24 = vsel %vm678_vm5, %v673_v20, %v675_v19 }
  0x9c   : > { %v186_v23 = vpop.permute.xlu1 %185 }
  0x9d   : > { %v190_v25 = vsel %vm189_vm1, %v184_v12, %v186_v23 }
  0x9e   : > { %1860 = vmatpush3.msk.msra.mxu1 %vm199_vm2, %v190_v25  ;;  %1792 = vmatmul.mubr.msk.f32.vlgmr.msra.gmra.mrb[0].mxu0 %vm195_vm3, %v172_v21  ;;  %v671_v26 = vpop.permute.xlu0 %670 }
  0x9f   : > { %1797 = vmatpush1.msk.msra.mxu0 %vm199_vm2, %v511_v22  ;;  %1862 = vmatmul.mubr.msk.f32.vlgmr.msra.gmra.mrb[0].mxu1 %vm195_vm3, %v1784_v14  ;;  %v681_v33 = vsel %vm678_vm5, %v671_v26, %v673_v20 }
  0xa0   : > { %1802 = vmatprep.subr.msk.mxu0 %vm199_vm2, %v680_v24  ;;  %v845_v27 = vpop.permute.xlu1 %844  ;;  %1864 = vmatprep.subr.mxu1 %v2039_v0 }
  0xa1   : > { %1865 = vmatpush3.msk.msra.mxu1 %vm199_vm2, %v2134_v3  ;;  %1866 = vmatprep.mubr.msk.f32.mxu1 %vm2042_vm0, %v2039_v0 }
  0xa2   : > { %v843_v28 = vpop.permute.xlu0 %842  ;;  %590 = vmatprep.mubr.f32.mxu0 %v2039_v0  ;;  %1869 = vmatprep.subr.mxu1 %v2039_v0 }
  0xa3   : > { %1867 = vmatmul.mubr.msk.f32.vlgmr.msra.gmra.mrb[2].mxu1 %vm195_vm3, %v172_v21  ;;  %v850_v31 = vsel %vm848_vm6, %v843_v28, %v845_v27 }
  0xa4   : > { %v507_v30 = vpop.permute.xlu1 %506  ;;  %1871 = vmatprep.mubr.msk.f32.mxu1 %vm2042_vm0, %v2039_v0 }
  0xa5   : > { %v509_v32 = vsel %vm508_vm4, %v505_v17, %v507_v30 }
  0xa6   : > { %1798 = vmatmul.mubr.msk.f32.vlgmr.msra.gmra.mrb[0].mxu0 %vm195_vm3, %v1795_v29  ;;  %1870 = vmatpush3.msk.msra.mxu1 %vm199_vm2, %v509_v32  ;;  %v841_v34 = vpop.permute.xlu0 %840 }
  0xa7   : > { %1803 = vmatpush1.msk.msra.mxu0 %vm199_vm2, %v681_v33  ;;  %760 = vmatprep.mubr.f32.mxu0 %v2039_v0  ;;  %v851_v41 = vsel %vm848_vm6, %v841_v34, %v843_v28 }
  0xa8   : > { %1808 = vmatprep.subr.msk.mxu0 %vm199_vm2, %v850_v31  ;;  %v1015_v35 = vpop.permute.xlu1 %1014  ;;  %1874 = vmatprep.subr.mxu1 %v2039_v0 }
  0xa9   : > { %1872 = vmatmul.mubr.msk.f32.vlgmr.msra.gmra.mrb[4].mxu1 %vm195_vm3, %v1795_v29 }
  0xaa   : > { %v1013_v36 = vpop.permute.xlu0 %1012  ;;  %1876 = vmatprep.mubr.msk.f32.mxu1 %vm2042_vm0, %v2039_v0 }
  0xab   : > { %v1020_v39 = vsel %vm1018_vm7, %v1013_v36, %v1015_v35 }
  0xac   : > { %v677_v38 = vpop.permute.xlu1 %676 }
  0xad   : > { %v679_v40 = vsel %vm678_vm5, %v675_v19, %v677_v38 }
  0xae   : > { %1804 = vmatmul.mubr.msk.f32.vlgmr.msra.gmra.mrb[0].mxu0 %vm195_vm3, %v1801_v37  ;;  %1875 = vmatpush3.msk.msra.mxu1 %vm199_vm2, %v679_v40  ;;  %v1011_v42 = vpop.permute.xlu0 %1010 }
  0xaf   : > { %1809 = vmatpush1.msk.msra.mxu0 %vm199_vm2, %v851_v41  ;;  %1879 = vmatprep.subr.mxu1 %v2039_v0  ;;  %v1021_v48 = vsel %vm1018_vm7, %v1011_v42, %v1013_v36 }
  0xb0   : > { %1814 = vmatprep.subr.msk.mxu0 %vm199_vm2, %v1020_v39  ;;  %v1183_v43 = vpop.permute.xlu1 %1182  ;;  %1877 = vmatmul.mubr.msk.f32.vlgmr.msra.gmra.mrb[6].mxu1 %vm195_vm3, %v1801_v37 }
  0xb1   : > { %930 = vmatprep.mubr.f32.mxu0 %v2039_v0  ;;  %1881 = vmatprep.mubr.msk.f32.mxu1 %vm2042_vm0, %v2039_v0 }
  0xb2   : > { %v847_v44 = vpop.permute.xlu0 %846 }
  0xb3   : > { %v849_v45 = vsel %vm848_vm6, %v845_v27, %v847_v44 }
  0xb4   : > { %1880 = vmatpush3.msk.msra.mxu1 %vm199_vm2, %v849_v45  ;;  %v1181_v47 = vpop.permute.xlu1 %1180 }
  0xb5   : > { %1882 = vmatmul.mubr.msk.f32.vlgmr.msra.gmra.mrb[8].mxu1 %vm195_vm3, %v1807_v46  ;;  %1884 = vmatprep.subr.mxu1 %v2039_v0  ;;  %v1191_v56 = vsel %vm1188_vm8, %v1181_v47, %v1183_v43 }
  0xb6   : > { %1810 = vmatmul.mubr.msk.f32.vlgmr.msra.gmra.mrb[0].mxu0 %vm195_vm3, %v1807_v46  ;;  %v1185_v49 = vpop.permute.xlu0 %1184  ;;  %1886 = vmatprep.mubr.msk.f32.mxu1 %vm2042_vm0, %v2039_v0 }
  0xb7   : > { %1815 = vmatpush1.msk.msra.mxu0 %vm199_vm2, %v1021_v48  ;;  %v1190_v50 = vsel %vm1188_vm8, %v1183_v43, %v1185_v49  ;;  %1100 = vmatprep.mubr.f32.mxu0 %v2039_v0 }
  0xb8   : > { %1820 = vmatprep.subr.msk.mxu0 %vm199_vm2, %v1190_v50  ;;  %v1187_v51 = vpop.permute.xlu1 %1186 }
  0xb9   : > { %v1189_v54 = vsel %vm1188_vm8, %v1185_v49, %v1187_v51 }
  0xba   : > { %v1017_v52 = vpop.permute.xlu0 %1016 }
  0xbb   : > { %v1019_v55 = vsel %vm1018_vm7, %v1015_v35, %v1017_v52 }
  0xbc   : > { %1885 = vmatpush3.msk.msra.mxu1 %vm199_vm2, %v1019_v55  ;;  %v1355_v57 = vpop.permute.xlu1 %1354 }
  0xbd   : > { %1887 = vmatmul.mubr.msk.f32.vlgmr.msra.gmra.mrb[10].mxu1 %vm195_vm3, %v1813_v53  ;;  %1889 = vmatprep.subr.mxu1 %v2039_v0 }
  0xbe   : > { %1816 = vmatmul.mubr.msk.f32.vlgmr.msra.gmra.mrb[0].mxu0 %vm195_vm3, %v1813_v53  ;;  %1890 = vmatpush3.msk.msra.mxu1 %vm199_vm2, %v1189_v54  ;;  %v1353_v58 = vpop.permute.xlu0 %1352 }
  0xbf   : > { %1821 = vmatpush1.msk.msra.mxu0 %vm199_vm2, %v1191_v56  ;;  %v1360_v60 = vsel %vm1358_vm9, %v1353_v58, %v1355_v57  ;;  %1891 = vmatprep.mubr.msk.f32.mxu1 %vm2042_vm0, %v2039_v0 }
  0xc0   : > { %v1357_v61 = vpop.permute.xlu1 %1356  ;;  %1894 = vmatprep.subr.mxu1 %v2039_v0  ;;  %1826 = vmatprep.subr.msk.mxu0 %vm199_vm2, %v1360_v60 }
  0xc1   : > { %v1359_v62 = vsel %vm1358_vm9, %v1355_v57, %v1357_v61  ;;  %1892 = vmatmul.mubr.msk.f32.vlgmr.msra.gmra.mrb[12].mxu1 %vm195_vm3, %v1819_v59  ;;  %1270 = vmatprep.mubr.f32.mxu0 %v2039_v0 }
  0xc2   : > { %v1351_v63 = vpop.permute.xlu0 %1350  ;;  %1895 = vmatpush3.msk.msra.mxu1 %vm199_vm2, %v1359_v62  ;;  %1896 = vmatprep.mubr.msk.f32.mxu1 %vm2042_vm0, %v2039_v0 }
  0xc3   : > { %1899 = vmatprep.subr.mxu1 %v2039_v0  ;;  %v1361_v2 = vsel %vm1358_vm9, %v1351_v63, %v1353_v58 }
  0xc4   : > { %v1525_v3 = vpop.permute.xlu1 %1524 }
  0xc5   : > { %1897 = vmatmul.mubr.msk.f32.vlgmr.msra.gmra.mrb[14].mxu1 %vm195_vm3, %v1825_v1 }
  0xc6   : > { %1822 = vmatmul.mubr.msk.f32.vlgmr.msra.gmra.mrb[0].mxu0 %vm195_vm3, %v1819_v59  ;;  %v1523_v4 = vpop.permute.xlu0 %1522  ;;  %1901 = vmatprep.mubr.msk.f32.mxu1 %vm2042_vm0, %v2039_v0 }
  0xc7   : > { %1827 = vmatpush1.msk.msra.mxu0 %vm199_vm2, %v1361_v2  ;;  %v1530_v5 = vsel %vm1528_vm10, %v1523_v4, %v1525_v3  ;;  %1440 = vmatprep.mubr.f32.mxu0 %v2039_v0 }
  0xc8   : > { %1832 = vmatprep.subr.msk.mxu0 %vm199_vm2, %v1530_v5  ;;  %v1521_v6 = vpop.permute.xlu1 %1520 }
  0xc9   : > { %v1531_v11 = vsel %vm1528_vm10, %v1521_v6, %v1523_v4 }
  0xca   : > { %v1527_v7 = vpop.permute.xlu0 %1526 }
  0xcb   : > { %v1529_v10 = vsel %vm1528_vm10, %v1525_v3, %v1527_v7 }
  0xcc   : > { %1900 = vmatpush3.msk.msra.mxu1 %vm199_vm2, %v1529_v10 }
  0xcd   : > { %1902 = vmatmul.mubr.msk.f32.vlgmr.msra.gmra.mrb[16].mxu1 %vm195_vm3, %v1831_v8 }
  0xce   : > { %1828 = vmatmul.mubr.msk.f32.vlgmr.msra.gmra.mrb[0].mxu0 %vm195_vm3, %v1825_v1 }
  0xcf   : > { %1833 = vmatpush1.msk.msra.mxu0 %vm199_vm2, %v1531_v11  ;;  %1610 = vmatprep.mubr.f32.mxu0 %v2039_v0 }
  0xd6   : > { %1834 = vmatmul.mubr.msk.f32.vlgmr.msra.gmra.mrb[0].mxu0 %vm195_vm3, %v1831_v8 }
  0xdb   : > { %v1693_v34 = vpop.permute.xlu0 %1692 }
 0x172   : > { %v346_v9 = vpop.f32.mrb[0].mxu1 }
 0x173   : > { %v1863_v12 = vpop.f32.mrb[1].mxu1 }
 0x176   : > { %v496_v13 = vpop.f32.mrb[2].mxu1 }
 0x177   : > { %v497_v14 = vadd.f32 %v496_v13, %v346_v9  ;;  %v1868_v15 = vpop.f32.mrb[3].mxu1 }
 0x17c   : > { %v663_v16 = vpop.f32.mrb[4].mxu1 }
 0x17d   : > { %v669_v17 = vadd.f32 %v663_v16, %v497_v14  ;;  %v1873_v18 = vpop.f32.mrb[5].mxu1 }
 0x183   : > { %v833_v19 = vpop.f32.mrb[6].mxu1 }
 0x184   : > { %v839_v20 = vadd.f32 %v833_v19, %v669_v17  ;;  %v1878_v21 = vpop.f32.mrb[7].mxu1 }
 0x188   : > { %v1003_v22 = vpop.f32.mrb[8].mxu1 }
 0x189   : > { %v1009_v23 = vadd.f32 %v1003_v22, %v839_v20  ;;  %v1883_v24 = vpop.f32.mrb[9].mxu1 }
 0x190   : > { %v1173_v25 = vpop.f32.mrb[10].mxu1 }
 0x191   : > { %v1179_v26 = vadd.f32 %v1173_v25, %v1009_v23  ;;  %v1888_v0 = vpop.f32.mrb[11].mxu1 }
 0x194   : > { %v1343_v27 = vpop.f32.mrb[12].mxu1 }
 0x195   : > { %v1349_v28 = vadd.f32 %v1343_v27, %v1179_v26  ;;  %v1893_v29 = vpop.f32.mrb[13].mxu1 }
 0x198   : > { %v1513_v30 = vpop.f32.mrb[14].mxu1 }
 0x199   : > { %v1519_v31 = vadd.f32 %v1513_v30, %v1349_v28  ;;  %v1898_v32 = vpop.f32.mrb[15].mxu1 }
 0x1a0   : > { %v1683_v33 = vpop.f32.mrb[16].mxu1 }
 0x1a1   : > { %v1689_v35 = vadd.f32 %v1683_v33, %v1519_v31  ;;  %v1903_v36 = vpop.f32.mrb[17].mxu1 }
 0x1a3   : > { %v1697_v37 = vadd.f32 %v1693_v34, %v1689_v35 }
 0x1a5   : > { %v1700_v38 = vmax.f32 %v1697_v37, 0.0 }
 0x1a7   : > { %1703 = vst [vmem:[%s163_s20 + $0x10] sm:$0xff] %v1700_v38 }
 0x1a9   : > { %v1612_v39 = vpop.f32.mrb[0].mxu0 }
 0x1aa   : > { %v1695_v40 = vadd.f32 %v1693_v34, %v1612_v39  ;;  %v1614_v41 = vpop.f32.mrb[1].mxu0 }
 0x1ab   : > { %v1696_v42 = vadd.f32 %v1693_v34, %v1614_v41 }
 0x1ac   : > { %v1698_v43 = vmax.f32 %v1695_v40, 0.0 }
 0x1ad   : > { %v1699_v44 = vmax.f32 %v1696_v42, 0.0 }
 0x1ae   : > { %1701 = vst [vmem:[%s163_s20] sm:$0xff] %v1698_v43 }
 0x1af   : > { %1702 = vst [vmem:[%s163_s20 + $0x8] sm:$0xff] %v1699_v44 }
 0x1b0   : > { %1988 = shalt.err (!%p1985_p3)
}
 0x1b1   : > { %s1989_s6 = scalar_lea.hbm %s2329_s28, 384  ;;  %s1993_s9 = scalar_lea.hbm %s2374_s3, 768 }
 0x1b2   : > { %p1990_p4 = scmp.ne.s32.totalorder %s2329_s28, %s1989_s6  ;;  %p1994_p9 = scmp.lt.u32.totalorder %s2329_s28, %s2374_s3 }
 0x1b3   : > { %p1995_p10 = scmp.lt.u32.totalorder %s1993_s9, %s1989_s6  ;;  %p1997_p12 = scmp.lt.u32.totalorder %s1989_s6, %s2329_s28 }
 0x1b4   : > { %p1991_p7 = pnand %p1990_p4, %p2109_p5 }
 0x1b5   : > { %p1996_p11 = por %p1995_p10, %p1994_p9 }
 0x1b6   : > { %p1992_p8 = pneg %p1991_p7 }
 0x1b7   : > { %p1998_p13 = por %p1997_p12, %p1996_p11 }
 0x1b9   : > { %p1999_p0 = pnand %p1998_p13, %p1992_p8 }
 0x1bb   : > { %2002 = shalt.err (!%p1999_p0)
}
 0x1bc   : > { %1922 = dma.vmem_to_hbm [thread:$0]  (%p2109_p5), %s2331_s25, 384, %s2329_s28, %s1705_s29  }
 0x1bd PF: > { %p1928_p1 = scmp.ge.s32.totalorder %s2037_s15, 2  ;;  %s1731_s17 = sand.u32 1, %s2025_s12  }
 0x1be   : > { %s1732_s19 = scalar_lea.sflag [#allocation3], %s1731_s17 }
 0x1bf   : > { %p1925_p2 = pnand %p1928_p1, %p2113_p6 }
 0x1c1   : > { %2020 = dma.done.wait (!%p1925_p2), %s1732_s19, 384  }
 0x1c2   : > { %2022 = vsyncadd (!%p1925_p2), %s1732_s19, 4294966912  ;;  %p13_p3 = scmp.ge.s32.totalorder %s2096_s18, 4   ;;  %s2377_s12 = smov %s2029_s13 }
 0x1c3   : > { %s2378_s13 = smov %s2033_s14  ;;  %s2379_s14 = smov %s2107_s21 }
 0x1c4   : > { %s2380_s15 = smov %s2096_s18  ;;  %15 = sbr.rel (!%p13_p3) target bundleno = 3 (0x3), region = 75 }
 0x1cb   :  { %1737 = vsyncpa [#allocation3], 1 }
 0x1cc   :  { %1739 = vsyncpa [#allocation3 + $0x1], 1 }

</bundles_post_ra>
